<compile_context>
chip_gen: v7x
topology: tpu7x:2x2x1
jax: 0.10.0
libtpu: 0.0.40
codegen_flags: <defaults>
</compile_context>

<pallas_src>
import functools

import jax
import jax.numpy as jnp
from jax import lax
from jax.experimental import pallas as pl
from jax.experimental.pallas import tpu as pltpu


_TARGET_BLOCK_BYTES = 1 << 20  # ~1 MiB main block per grid step


def _dwconv_kernel(*refs, BB, TH, WC, C, has_halo):
    """Depthwise 3x3 conv on one block.

    has_halo (row-tiled, BB == 1):
        refs = x_ref (1, TH, WC), top_ref (1,1,1,WC), bot_ref (1,1,1,WC),
               w_ref (3,3,WC), b_ref (1,WC), o_ref (1, TH, WC)
    not has_halo (TH == H, batch-folded):
        refs = x_ref (BB, H, WC), w_ref (3,3,WC), b_ref (1,WC), o_ref (BB, H, WC)

    The 3x3 taps are pre-tiled across W and already zeroed on the lanes that
    would read across the left/right image border, so no lane masking is needed
    in the kernel.
    """
    if has_halo:
        x_ref, top_ref, bot_ref, w_ref, b_ref, o_ref = refs
    else:
        x_ref, w_ref, b_ref, o_ref = refs

    # Load the 9 (pre-masked) taps and the bias once per grid step.
    taps = [[w_ref[kh, pl.ds(kw, 1), :].astype(jnp.float32) for kw in range(3)]
            for kh in range(3)]
    bias = b_ref[...].astype(jnp.float32)                       # (1, WC)

    row = lax.broadcasted_iota(jnp.int32, (TH, WC), 0)
    first_row = row == 0
    last_row = row == TH - 1

    if has_halo:  # BB == 1 in this mode
        i = pl.program_id(1)
        last = pl.num_programs(1) - 1
        top = jnp.where(i > 0, top_ref[0, 0].astype(jnp.float32), 0.0)   # (1, WC)
        bot = jnp.where(i < last, bot_ref[0, 0].astype(jnp.float32), 0.0)

    for bb in range(BB):  # static unroll over batch-folded images
        x_mid = x_ref[bb].astype(jnp.float32)                   # (TH, WC)

        # dh-shifted row views: sublane roll (XLU) + 1-row fixup.
        if has_halo:
            x_up = jnp.where(first_row, top, pltpu.roll(x_mid, 1, axis=0))
            x_dn = jnp.where(last_row, bot, pltpu.roll(x_mid, TH - 1, axis=0))
        else:
            # TH == H: the rows above/below the image are zero padding.
            x_up = jnp.where(first_row, 0.0, pltpu.roll(x_mid, 1, axis=0))
            x_dn = jnp.where(last_row, 0.0, pltpu.roll(x_mid, TH - 1, axis=0))

        # f32 accumulator initialized with the bias (broadcasts on first add).
        acc = bias
        for kh, view in enumerate((x_up, x_mid, x_dn)):
            tap_l, tap_c, tap_r = taps[kh]
            # dw = -1 : column w-1 -> lane roll by +C. Wrapped lanes hit a zero tap.
            acc = acc + pltpu.roll(view, C, axis=1) * tap_l
            # dw = 0
            acc = acc + view * tap_c
            # dw = +1 : column w+1 -> lane roll by -C (== WC-C). Wrapped lanes hit a zero tap.
            acc = acc + pltpu.roll(view, WC - C, axis=1) * tap_r

        o_ref[bb] = acc.astype(o_ref.dtype)


def _th_candidates(H, sub):
    """Legal tile heights: divisors of H that are multiples of the sublane
    packing, plus H itself (a full-extent block is always legal)."""
    cands = [t for t in range(sub, H, sub) if H % t == 0]
    cands.append(H)
    return cands


def _pick_block_h(H, WC, itemsize, sub):
    """Largest legal TH whose main block stays within ~_TARGET_BLOCK_BYTES."""
    row_bytes = WC * itemsize
    cands = _th_candidates(H, sub)
    ok = [t for t in cands if t * row_bytes <= _TARGET_BLOCK_BYTES]
    return ok[-1] if ok else cands[0]


def _pick_block_b(B, H, WC, itemsize, TH):
    """Fold batch images into one block when TH == H (small feature maps),
    while keeping >= 2 grid programs (v7x has 2 TensorCores) and staying
    within the target block size."""
    if TH != H:
        return 1
    plane_bytes = H * WC * itemsize
    bb = 1
    while (B % (bb * 2) == 0
           and B // (bb * 2) >= 2
           and bb * 2 * plane_bytes <= _TARGET_BLOCK_BYTES):
        bb *= 2
    return bb


def dwconv_pallas(x, weight, bias, H, W, *, block_h=None, block_b=None):
    """Depthwise 3x3 'same' conv on (B, N, C) tokens.

    x     : (B, N, C) with N == H*W (PyTorch flatten(2).transpose(1,2) order)
    weight: (C, 1, 3, 3)  -- torch nn.Conv2d(C, C, 3, groups=C).weight layout
    bias  : (C,)

    Performance is best when W*C is a multiple of 128 (lane-dense, unmasked
    vector stores); other shapes are still computed correctly.
    """
    B, N, C = x.shape
    assert N == H * W
    assert weight.shape == (C, 1, 3, 3)
    assert bias.shape == (C,)

    WC = W * C
    itemsize = jnp.dtype(x.dtype).itemsize
    sub = max(8, 32 // itemsize)  # sublane packing: 8 f32, 16 bf16, 32 int8/fp8

    # ---- tile selection (bandwidth-aware, dtype-aware, v7x-friendly) ----
    if block_h is None:
        TH = _pick_block_h(H, WC, itemsize, sub)
        if B * (H // TH) < 2:  # keep >= 2 programs for v7x's 2 TensorCores
            smaller = [t for t in _th_candidates(H, sub) if t < TH]
            if smaller:
                TH = smaller[-1]
    else:
        TH = block_h
        assert TH == H or (H % TH == 0 and TH % sub == 0), (
            "block_h must either equal H or divide H and be a multiple of the "
            f"sublane packing ({sub}) for this dtype")
    assert H % TH == 0

    if block_b is None:
        BB = _pick_block_b(B, H, WC, itemsize, TH)
    else:
        BB = block_b
        assert B % BB == 0 and (BB == 1 or TH == H), (
            "block_b > 1 requires block_h == H and block_b | B")

    has_halo = (H // TH) > 1  # row tiling => need the 1-row halos

    # ---- layout glue (pure reshapes; token order preserved) ----
    # lane-dense (B, H, W*C): lane l = w*C + c
    x3 = x.reshape(B, H, WC)

    # torch (C,1,3,3) -> (3,3,C) -> tiled across W -> (3,3,W*C); same for bias.
    w_33c = jnp.transpose(weight[:, 0, :, :], (1, 2, 0))                    # (3,3,C)
    w_flat = jnp.tile(w_33c[:, :, None, :], (1, 1, W, 1)).reshape(3, 3, WC)
    # Fold the left/right zero-padding into the taps: zero the kw=0 tap on the
    # first image column's lanes and the kw=2 tap on the last column's lanes.
    lane = jnp.arange(WC)
    w_flat = w_flat.at[:, 0, :].multiply((lane >= C).astype(w_flat.dtype))
    w_flat = w_flat.at[:, 2, :].multiply((lane < WC - C).astype(w_flat.dtype))
    b_flat = jnp.tile(bias, W).reshape(1, WC)

    kernel = functools.partial(_dwconv_kernel, BB=BB, TH=TH, WC=WC, C=C,
                               has_halo=has_halo)
    cparams = pltpu.CompilerParams(
        dimension_semantics=("parallel", "parallel") if has_halo else ("parallel",),
        vmem_limit_bytes=32 * 1024 * 1024,
    )

    if has_halo:
        # Row-tiled path: per-image row tiles plus two clamped 1-row halo DMAs
        # (masked to zero at the top/bottom image border inside the kernel).
        x4 = x3.reshape(B, H, 1, WC)  # unit-sublane view for exact 1-row halos
        out3 = pl.pallas_call(
            kernel,
            out_shape=jax.ShapeDtypeStruct((B, H, WC), x.dtype),
            grid_spec=pltpu.PrefetchScalarGridSpec(
                num_scalar_prefetch=0,
                grid=(B, H // TH),
                in_specs=[
                    # main row tile
                    pl.BlockSpec((1, TH, WC), lambda b, i: (b, i, 0)),
                    # top halo row (clamped on the first tile; masked in kernel)
                    pl.BlockSpec((1, 1, 1, WC),
                                 lambda b, i: (b, jnp.maximum(i * TH - 1, 0), 0, 0)),
                    # bottom halo row (clamped on the last tile; masked in kernel)
                    pl.BlockSpec((1, 1, 1, WC),
                                 lambda b, i: (b, jnp.minimum((i + 1) * TH, H - 1), 0, 0)),
                    # taps + bias (small, resident)
                    pl.BlockSpec((3, 3, WC), lambda b, i: (0, 0, 0)),
                    pl.BlockSpec((1, WC), lambda b, i: (0, 0)),
                ],
                out_specs=pl.BlockSpec((1, TH, WC), lambda b, i: (b, i, 0)),
            ),
            compiler_params=cparams,
        )(x3, x4, x4, w_flat, b_flat)
    else:
        # Full-height (optionally batch-folded) path: no halo DMAs at all.
        out3 = pl.pallas_call(
            kernel,
            out_shape=jax.ShapeDtypeStruct((B, H, WC), x.dtype),
            grid_spec=pltpu.PrefetchScalarGridSpec(
                num_scalar_prefetch=0,
                grid=(B // BB,),
                in_specs=[
                    pl.BlockSpec((BB, H, WC), lambda b: (b, 0, 0)),
                    pl.BlockSpec((3, 3, WC), lambda b: (0, 0, 0)),
                    pl.BlockSpec((1, WC), lambda b: (0, 0)),
                ],
                out_specs=pl.BlockSpec((BB, H, WC), lambda b: (b, 0, 0)),
            ),
            compiler_params=cparams,
        )(x3, w_flat, b_flat)

    # ---- glue: Patch2Token ----
    return out3.reshape(B, N, C)


def _reference_dwconv(x, weight, bias, H, W):
    """Pure-JAX reference mirroring nn.Conv2d(C, C, 3, padding=1, groups=C)."""
    B, N, C = x.shape
    x_nchw = jnp.transpose(x, (0, 2, 1)).reshape(B, C, H, W)
    y = lax.conv_general_dilated(
        x_nchw, weight, window_strides=(1, 1), padding=((1, 1), (1, 1)),
        dimension_numbers=("NCHW", "OIHW", "NCHW"), feature_group_count=C)
    y = y + bias[None, :, None, None]
    return jnp.transpose(y.reshape(B, C, N), (0, 2, 1))  # (B, N, C)


if __name__ == "__main__":
    B, C, H, W = 2, 8, 16, 16
    N = H * W

    key = jax.random.PRNGKey(0)
    kx, kw, kb = jax.random.split(key, 3)

    x = jax.random.normal(kx, (B, N, C), dtype=jnp.float32)
    weight = 0.1 * jax.random.normal(kw, (C, 1, 3, 3), dtype=jnp.float32)
    bias = 0.1 * jax.random.normal(kb, (C,), dtype=jnp.float32)

    ref = _reference_dwconv(x, weight, bias, H, W)

    # Default auto-tiled path (full-height blocks, no halo DMAs, >=2 programs).
    out_auto = jax.block_until_ready(dwconv_pallas(x, weight, bias, H, W))
    assert out_auto.shape == (B, N, C)
    assert jnp.allclose(out_auto, ref, atol=1e-5, rtol=1e-5), "auto mismatch vs reference"

    # Row-tiled path (exercises the H halo DMAs + border masking across tiles).
    out_rows = jax.block_until_ready(dwconv_pallas(x, weight, bias, H, W, block_h=8))
    assert jnp.allclose(out_rows, ref, atol=1e-5, rtol=1e-5), "row-tiled mismatch vs reference"

    # Batch-folded path (exercises BB > 1 full-height blocks, no halos).
    out_fold = jax.block_until_ready(
        dwconv_pallas(x, weight, bias, H, W, block_h=H, block_b=2))
    assert jnp.allclose(out_fold, ref, atol=1e-5, rtol=1e-5), "batch-fold mismatch vs reference"

    print("KERNEL_OK")
</pallas_src>

<mosaic_0001>
module attributes {stable_mosaic.version = 11 : i64} {
  func.func @_dwconv_kernel(%arg0: i32, %arg1: memref<1x16x128xf32, #tpu.memory_space<vmem>>, %arg2: memref<3x3x128xf32, #tpu.memory_space<vmem>>, %arg3: memref<1x128xf32, #tpu.memory_space<vmem>>, %arg4: memref<1x16x128xf32, #tpu.memory_space<vmem>>) attributes {dimension_semantics = [#tpu.dimension_semantics<parallel>], iteration_bounds = array<i64: 2>, scalar_prefetch = 0 : i64, scratch_operands = 0 : i64, tpu.core_type = #tpu.core_type<tc>, window_params = [{transform_indices = @transform_0, window_bounds = array<i64: 1, 16, 128>}, {pipeline_mode = #tpu.pipeline_mode<synchronous>, transform_indices = @transform_1, window_bounds = array<i64: 3, 3, 128>}, {pipeline_mode = #tpu.pipeline_mode<synchronous>, transform_indices = @transform_2, window_bounds = array<i64: 1, 128>}, {transform_indices = @transform_3, window_bounds = array<i64: 1, 16, 128>}]} {
    %c0 = arith.constant 0 : index
    %c0_0 = arith.constant 0 : index
    %c0_1 = arith.constant 0 : index
    %0 = vector.load %arg2[%c0, %c0_0, %c0_1] : memref<3x3x128xf32, #tpu.memory_space<vmem>>, vector<1x1x128xf32>
    %1 = vector.shape_cast %0 : vector<1x1x128xf32> to vector<1x128xf32>
    %c0_2 = arith.constant 0 : index
    %c1 = arith.constant 1 : index
    %c0_3 = arith.constant 0 : index
    %2 = vector.load %arg2[%c0_2, %c1, %c0_3] : memref<3x3x128xf32, #tpu.memory_space<vmem>>, vector<1x1x128xf32>
    %3 = vector.shape_cast %2 : vector<1x1x128xf32> to vector<1x128xf32>
    %c0_4 = arith.constant 0 : index
    %c2 = arith.constant 2 : index
    %c0_5 = arith.constant 0 : index
    %4 = vector.load %arg2[%c0_4, %c2, %c0_5] : memref<3x3x128xf32, #tpu.memory_space<vmem>>, vector<1x1x128xf32>
    %5 = vector.shape_cast %4 : vector<1x1x128xf32> to vector<1x128xf32>
    %c1_6 = arith.constant 1 : index
    %c0_7 = arith.constant 0 : index
    %c0_8 = arith.constant 0 : index
    %6 = vector.load %arg2[%c1_6, %c0_7, %c0_8] : memref<3x3x128xf32, #tpu.memory_space<vmem>>, vector<1x1x128xf32>
    %7 = vector.shape_cast %6 : vector<1x1x128xf32> to vector<1x128xf32>
    %c1_9 = arith.constant 1 : index
    %c1_10 = arith.constant 1 : index
    %c0_11 = arith.constant 0 : index
    %8 = vector.load %arg2[%c1_9, %c1_10, %c0_11] : memref<3x3x128xf32, #tpu.memory_space<vmem>>, vector<1x1x128xf32>
    %9 = vector.shape_cast %8 : vector<1x1x128xf32> to vector<1x128xf32>
    %c1_12 = arith.constant 1 : index
    %c2_13 = arith.constant 2 : index
    %c0_14 = arith.constant 0 : index
    %10 = vector.load %arg2[%c1_12, %c2_13, %c0_14] : memref<3x3x128xf32, #tpu.memory_space<vmem>>, vector<1x1x128xf32>
    %11 = vector.shape_cast %10 : vector<1x1x128xf32> to vector<1x128xf32>
    %c2_15 = arith.constant 2 : index
    %c0_16 = arith.constant 0 : index
    %c0_17 = arith.constant 0 : index
    %12 = vector.load %arg2[%c2_15, %c0_16, %c0_17] : memref<3x3x128xf32, #tpu.memory_space<vmem>>, vector<1x1x128xf32>
    %13 = vector.shape_cast %12 : vector<1x1x128xf32> to vector<1x128xf32>
    %c2_18 = arith.constant 2 : index
    %c1_19 = arith.constant 1 : index
    %c0_20 = arith.constant 0 : index
    %14 = vector.load %arg2[%c2_18, %c1_19, %c0_20] : memref<3x3x128xf32, #tpu.memory_space<vmem>>, vector<1x1x128xf32>
    %15 = vector.shape_cast %14 : vector<1x1x128xf32> to vector<1x128xf32>
    %c2_21 = arith.constant 2 : index
    %c2_22 = arith.constant 2 : index
    %c0_23 = arith.constant 0 : index
    %16 = vector.load %arg2[%c2_21, %c2_22, %c0_23] : memref<3x3x128xf32, #tpu.memory_space<vmem>>, vector<1x1x128xf32>
    %17 = vector.shape_cast %16 : vector<1x1x128xf32> to vector<1x128xf32>
    %c0_24 = arith.constant 0 : index
    %c0_25 = arith.constant 0 : index
    %18 = vector.load %arg3[%c0_24, %c0_25] : memref<1x128xf32, #tpu.memory_space<vmem>>, vector<1x128xf32>
    %19 = tpu.iota {dimensions = array<i32: 0>} : vector<16x128xi32>
    %c0_i32 = arith.constant 0 : i32
    %20 = vector.broadcast %c0_i32 : i32 to vector<16x128xi32>
    %21 = arith.cmpi eq, %19, %20 : vector<16x128xi32>
    %c15_i32 = arith.constant 15 : i32
    %22 = vector.broadcast %c15_i32 : i32 to vector<16x128xi32>
    %23 = arith.cmpi eq, %19, %22 : vector<16x128xi32>
    %c0_26 = arith.constant 0 : index
    %c0_27 = arith.constant 0 : index
    %c0_28 = arith.constant 0 : index
    %24 = vector.load %arg1[%c0_26, %c0_27, %c0_28] : memref<1x16x128xf32, #tpu.memory_space<vmem>>, vector<1x16x128xf32>
    %25 = vector.shape_cast %24 : vector<1x16x128xf32> to vector<16x128xf32>
    %c1_i32 = arith.constant 1 : i32
    %26 = tpu.dynamic_rotate %25 by %c1_i32 dim 0 : vector<16x128xf32>, i32 -> vector<16x128xf32>
    %cst = arith.constant 0.000000e+00 : f32
    %27 = vector.broadcast %cst : f32 to vector<16x128xf32>
    %28 = arith.select %21, %27, %26 : vector<16x128xi1>, vector<16x128xf32>
    %c15_i32_29 = arith.constant 15 : i32
    %29 = tpu.dynamic_rotate %25 by %c15_i32_29 dim 0 : vector<16x128xf32>, i32 -> vector<16x128xf32>
    %cst_30 = arith.constant 0.000000e+00 : f32
    %30 = vector.broadcast %cst_30 : f32 to vector<16x128xf32>
    %31 = arith.select %23, %30, %29 : vector<16x128xi1>, vector<16x128xf32>
    %c8_i32 = arith.constant 8 : i32
    %32 = tpu.dynamic_rotate %28 by %c8_i32 dim 1 : vector<16x128xf32>, i32 -> vector<16x128xf32>
    %33 = vector.broadcast %1 : vector<1x128xf32> to vector<16x128xf32>
    %34 = arith.mulf %32, %33 : vector<16x128xf32>
    %35 = vector.broadcast %18 : vector<1x128xf32> to vector<16x128xf32>
    %36 = arith.addf %35, %34 : vector<16x128xf32>
    %37 = vector.broadcast %3 : vector<1x128xf32> to vector<16x128xf32>
    %38 = arith.mulf %28, %37 : vector<16x128xf32>
    %39 = arith.addf %36, %38 : vector<16x128xf32>
    %c120_i32 = arith.constant 120 : i32
    %40 = tpu.dynamic_rotate %28 by %c120_i32 dim 1 : vector<16x128xf32>, i32 -> vector<16x128xf32>
    %41 = vector.broadcast %5 : vector<1x128xf32> to vector<16x128xf32>
    %42 = arith.mulf %40, %41 : vector<16x128xf32>
    %43 = arith.addf %39, %42 : vector<16x128xf32>
    %c8_i32_31 = arith.constant 8 : i32
    %44 = tpu.dynamic_rotate %25 by %c8_i32_31 dim 1 : vector<16x128xf32>, i32 -> vector<16x128xf32>
    %45 = vector.broadcast %7 : vector<1x128xf32> to vector<16x128xf32>
    %46 = arith.mulf %44, %45 : vector<16x128xf32>
    %47 = arith.addf %43, %46 : vector<16x128xf32>
    %48 = vector.broadcast %9 : vector<1x128xf32> to vector<16x128xf32>
    %49 = arith.mulf %25, %48 : vector<16x128xf32>
    %50 = arith.addf %47, %49 : vector<16x128xf32>
    %c120_i32_32 = arith.constant 120 : i32
    %51 = tpu.dynamic_rotate %25 by %c120_i32_32 dim 1 : vector<16x128xf32>, i32 -> vector<16x128xf32>
    %52 = vector.broadcast %11 : vector<1x128xf32> to vector<16x128xf32>
    %53 = arith.mulf %51, %52 : vector<16x128xf32>
    %54 = arith.addf %50, %53 : vector<16x128xf32>
    %c8_i32_33 = arith.constant 8 : i32
    %55 = tpu.dynamic_rotate %31 by %c8_i32_33 dim 1 : vector<16x128xf32>, i32 -> vector<16x128xf32>
    %56 = vector.broadcast %13 : vector<1x128xf32> to vector<16x128xf32>
    %57 = arith.mulf %55, %56 : vector<16x128xf32>
    %58 = arith.addf %54, %57 : vector<16x128xf32>
    %59 = vector.broadcast %15 : vector<1x128xf32> to vector<16x128xf32>
    %60 = arith.mulf %31, %59 : vector<16x128xf32>
    %61 = arith.addf %58, %60 : vector<16x128xf32>
    %c120_i32_34 = arith.constant 120 : i32
    %62 = tpu.dynamic_rotate %31 by %c120_i32_34 dim 1 : vector<16x128xf32>, i32 -> vector<16x128xf32>
    %63 = vector.broadcast %17 : vector<1x128xf32> to vector<16x128xf32>
    %64 = arith.mulf %62, %63 : vector<16x128xf32>
    %65 = arith.addf %61, %64 : vector<16x128xf32>
    %c0_35 = arith.constant 0 : index
    %c0_36 = arith.constant 0 : index
    %c0_37 = arith.constant 0 : index
    %66 = vector.load %arg4[%c0_35, %c0_36, %c0_37] : memref<1x16x128xf32, #tpu.memory_space<vmem>>, vector<1x16x128xf32>
    %67 = vector.shape_cast %66 : vector<1x16x128xf32> to vector<16x128xf32>
    %68 = vector.shape_cast %65 : vector<16x128xf32> to vector<1x16x128xf32>
    tpu.vector_store %arg4[%c0_35, %c0_36, %c0_37], %68 {strides = array<i32>} : memref<1x16x128xf32, #tpu.memory_space<vmem>>, vector<1x16x128xf32>,
    return
  }
  func.func @transform_0(%arg0: i32) -> (i32, i32, i32) {
    %c0_i32 = arith.constant 0 : i32
    %c0_i32_0 = arith.constant 0 : i32
    %c0_i32_1 = arith.constant 0 : i32
    return %arg0, %c0_i32, %c0_i32_0 : i32, i32, i32
  }
  func.func @transform_1(%arg0: i32) -> (i32, i32, i32) {
    %c0_i32 = arith.constant 0 : i32
    %c0_i32_0 = arith.constant 0 : i32
    %c0_i32_1 = arith.constant 0 : i32
    %c0_i32_2 = arith.constant 0 : i32
    return %c0_i32, %c0_i32_0, %c0_i32_1 : i32, i32, i32
  }
  func.func @transform_2(%arg0: i32) -> (i32, i32) {
    %c0_i32 = arith.constant 0 : i32
    %c0_i32_0 = arith.constant 0 : i32
    %c0_i32_1 = arith.constant 0 : i32
    return %c0_i32, %c0_i32_0 : i32, i32
  }
  func.func @transform_3(%arg0: i32) -> (i32, i32, i32) {
    %c0_i32 = arith.constant 0 : i32
    %c0_i32_0 = arith.constant 0 : i32
    %c0_i32_1 = arith.constant 0 : i32
    return %arg0, %c0_i32, %c0_i32_0 : i32, i32, i32
  }
}

</mosaic_0001>

<bundles_post_ra>
// kernel: tpu_custom_call.1
= control target key start
LH: loop header
LB: loop body
LE: loop exit
PB: predicated region body
PF: predicated region fallthrough
CT: control target
= control target key end

     0   :  { %8 = vsyncpa [#allocation3], 0  ;;  %s907_s0 = inlined_call_operand.hbm [shape: f32[2,16,128], index: 0, kind: input, shape index: {}]   ;;  %s908_s1 = inlined_call_operand.hbm [shape: f32[3,3,128], index: 1, kind: input, shape index: {}]   ;;  %s909_s2 = inlined_call_operand.vmem [shape: f32[1,128], index: 2, kind: input, shape index: {}]   ;;  %s910_s3 = inlined_call_operand.hbm [shape: f32[2,16,128], index: 3, kind: output, shape index: {}]  }
   0x1   :  { %10 = vsyncpa [#allocation3 + $0x1], 0 }
   0x2   :  { %11 = vsyncpa [#allocation6], 0 }
   0x3   :  { %12 = vsyncpa [#allocation4], 0 }
   0x4   :  { %14 = vsyncpa [#allocation4 + $0x1], 0  ;;  %s692_s12 = smov 0   ;;  %s694_s13 = smov 0  }
   0x5   :  { %s696_s14 = smov 0   ;;  %s698_s15 = smov 0  }
   0x6 LB: > { %s713_s16 = sadd.s32 4294967295, %s660_s15   ;;  %s440_s17 = sadd.s32 4294967294, %s660_s15   ;;  %s660_s15 = sphi %s698_s15, %s930_s15   ;;  %s656_s14 = sphi %s696_s14, %s929_s14   ;;  %s652_s13 = sphi %s694_s13, %s928_s13   ;;  %s648_s12 = sphi %s692_s12, %s927_s12  }
   0x7   : > { %p40_p0 = scmp.ne.s32.totalorder %s652_s13, %s648_s12  ;;  %p911_p1 = scmp.eq.s32.totalorder %s713_s16, 0 }
   0x8   : > { %p112_p3 = scmp.eq.s32.totalorder %s440_s17, 1  ;;  %p441_p5 = scmp.ge.s32.totalorder %s660_s15, 1 }
   0x9   : > { %p722_p4 = por %p911_p1, %p40_p0  ;;  %p119_p7 = scmp.lt.s32.totalorder %s660_s15, 3 }
   0xa   : > { %p727_p6 = por %p112_p3, %p40_p0  ;;  %s662_s21 = smov [#allocation5]  }
   0xb   : > { %s914_s18 = scalar_select %p722_p4, 1, 0 }
   0xc   : > { %s915_s19 = scalar_select %p727_p6, 1, 0 }
   0xd   : > { %p732_p8 = pnand %p441_p5, %p119_p7  ;;  %s131_s22 = sshll.u32 %s662_s21, 4  ;;  %s736_s22 = int_to_ptr.vmem [resolvable:$true] %s131_s22 }
   0xe   : > { %s748_s24 = sadd.s32 1, %s660_s15   ;;  %s27_s25 = sadd.s32 1, %s656_s14 }
   0xf   : > { %s916_s20 = scalar_select %p732_p8, 1, 0 }
  0x10   : > { %p476_p9 = pneg %p732_p8  ;;  %s24_s26 = ssub.s32 %s660_s15, %s748_s24 }
  0x11   : > { %s532_s29 = scalar_lea.hbm %s908_s1, 192 }
  0x12   : > { %p743_p11 = pnand %p476_p9, %p911_p1  ;;  %p533_p12 = scmp.ne.s32.totalorder %s908_s1, %s532_s29 }
  0x13   : > { %p539_p5 = scmp.lt.u32.totalorder %s532_s29, %s908_s1 }
  0x14   : > { %p534_p13 = pneg %p743_p11 }
  0x16   : > { %p535_p0 = pnand %p534_p13, %p533_p12 }
  0x18   : > { %p536_p3 = pneg %p535_p0 }
  0x1a   : > { %p541_p7 = pnand %p539_p5, %p536_p3 }
  0x1c   : > { %544 = shalt.err (!%p541_p7)
}
  0x1d   : > { %s545_s7 = scalar_lea.vmem %s736_s22, 192  ;;  %p553_p2 = scmp.lt.s32.totalorder %s736_s22, %s736_s22 }
  0x1e   : > { %p546_p9 = scmp.ne.s32.totalorder %s736_s22, %s545_s7  ;;  %p554_p6 = scmp.lt.s32.totalorder %s545_s7, %s545_s7 }
  0x20   : > { %p548_p10 = pnand %p546_p9, %p534_p13  ;;  %p555_p4 = por %p554_p6, %p553_p2 }
  0x22   : > { %p549_p1 = pneg %p548_p10 }
  0x24   : > { %p556_p8 = pnand %p555_p4, %p549_p1 }
  0x26   : > { %559 = shalt.err (!%p556_p8)
}
  0x27   : > { %s663_s8 = smov 64   ;;  %s664_s9 = smov 4  }
  0x28   : > { %479 = dma.hbm_to_vmem [thread:$0]  (!%p743_p11), %s908_s1, 192, %s736_s22, [#allocation6], %s663_s8, %s663_s8, %s664_s9  }
  0x29   : > { %p25_p2 = scmp.eq.s32.totalorder %s24_s26, 0  ;;  %p34_p1 = scmp.ne.s32.totalorder %s656_s14, %s652_s13 }
  0x2a   : > { %p35_p4 = scmp.eq.s32.totalorder %s660_s15, 0  ;;  %p489_p6 = scmp.lt.s32.totalorder %s660_s15, 2 }
  0x2b   : > { %s779_s17 = scalar_select %p25_p2, %s656_s14, %s27_s25  }
  0x2c   : > { %p36_p8 = por %p35_p4, %p34_p1  ;;  %p918_p10 = scmp.eq.s32.totalorder %s713_s16, 1 }
  0x2d   : > { %s148_s27 = sand.u32 1, %s656_s14   ;;  %s466_s28 = sshll.u32 %s660_s15, 8 }
  0x2e   : > { %p783_p12 = por %p918_p10, %p34_p1  ;;  %s444_s29 = sshll.u32 %s148_s27, 4 }
  0x2f   : > { %s792_s4 = scalar_lea.hbm %s907_s0, %s466_s28  ;;  %s152_s22 = scalar_lea.vmem [#allocation2], %s444_s29 }
  0x30   : > { %s159_s25 = sshll.u32 %s152_s22, 4  ;;  %p794_p11 = pnand %p489_p6, %p36_p8  ;;  %s798_s25 = int_to_ptr.vmem [resolvable:$true] %s159_s25 }
  0x31   : > { %s800_s5 = scalar_lea.sflag [#allocation3], %s148_s27  ;;  %s560_s6 = scalar_lea.hbm %s792_s4, 256 }
  0x32   : > { %p561_p13 = scmp.ne.s32.totalorder %s792_s4, %s560_s6  ;;  %p562_p0 = pneg %p794_p11 }
  0x33   : > { %s565_s9 = scalar_lea.hbm %s907_s0, 512  ;;  %p566_p7 = scmp.lt.u32.totalorder %s792_s4, %s907_s0 }
  0x34   : > { %p563_p3 = pnand %p562_p0, %p561_p13  ;;  %p567_p9 = scmp.lt.u32.totalorder %s565_s9, %s560_s6 }
  0x35   : > { %p569_p1 = scmp.lt.u32.totalorder %s560_s6, %s792_s4 }
  0x36   : > { %p564_p5 = pneg %p563_p3  ;;  %p568_p2 = por %p567_p9, %p566_p7 }
  0x38   : > { %p570_p4 = por %p569_p1, %p568_p2 }
  0x3a   : > { %p571_p6 = pnand %p570_p4, %p564_p5 }
  0x3c   : > { %574 = shalt.err (!%p571_p6)
}
  0x3d   : > { %s575_s27 = scalar_lea.vmem %s798_s25, 256  ;;  %s665_s28 = smov [#allocation2]  }
  0x3e   : > { %p576_p8 = scmp.ne.s32.totalorder %s798_s25, %s575_s27  ;;  %s580_s29 = sshll.u32 %s665_s28, 4  ;;  %s581_s29 = int_to_ptr.vmem [resolvable:$false] %s580_s29 }
  0x3f   : > { %s582_s23 = scalar_lea.vmem %s581_s29, 512  ;;  %p583_p3 = scmp.lt.s32.totalorder %s798_s25, %s581_s29 }
  0x40   : > { %p578_p10 = pnand %p576_p8, %p562_p0  ;;  %p584_p7 = scmp.lt.s32.totalorder %s582_s23, %s575_s27 }
  0x42   : > { %p579_p13 = pneg %p578_p10  ;;  %p585_p9 = por %p584_p7, %p583_p3 }
  0x44   : > { %p586_p2 = pnand %p585_p9, %p579_p13 }
  0x46   : > { %589 = shalt.err (!%p586_p2)
}
  0x47   : > { %s666_s30 = smov 128   ;;  %s667_s22 = smov 8  }
  0x48   : > { %483 = dma.hbm_to_vmem [thread:$0]  (!%p794_p11), %s792_s4, 256, %s798_s25, %s800_s5, %s666_s30, %s666_s30, %s667_s22  }
  0x49   : > { %p921_p0 = scmp.ne.s32.totalorder %s916_s20, 0 }
  0x4a   : > { %s831_s6 = sand.u32 (!%p921_p0), 1, %s652_s13   ;;  %p922_p5 = scmp.ne.s32.totalorder (!%p921_p0), %s914_s18, 0 }
  0x4b   : > { %171 = sbr.rel (%p921_p0) target bundleno = 246 (0xf6), region = 32  ;;  %s448_s7 = sshll.u32 (!%p921_p0), %s831_s6, 4 }
  0x4c   : > { %s174_s8 = scalar_lea.sflag (!%p921_p0), [#allocation3], %s831_s6  ;;  %s177_s9 = scalar_lea.vmem (!%p921_p0), [#allocation2], %s448_s7 }
  0x52   : > { %635 = dma.done.wait (%p922_p5), %s174_s8, 256  }
  0x53   : > { %637 = vsyncadd (%p922_p5), %s174_s8, 4294967040  ;;  %p923_p11 = scmp.eq.s32.totalorder %s713_s16, 0 }
  0x55   : > { %639 = dma.done.wait (%p923_p11), [#allocation6], 192   ;;  %p924_p1 = pmov %p923_p11 }
  0x56   : > { %v216_v0 = vlaneseq  ;;  %v223_v2 = vld [vmem:[%s177_s9] sm:$0xff]  ;;  %v224_v3 = vld [vmem:[%s177_s9 + $0x8] sm:$0xff]  ;;  %s668_s20 = smov 120   ;;  %s669_s18 = smov 8  }
  0x57   : > { %641 = vsyncadd (%p924_p1), [#allocation6], 4294967104  ;;  %v225_v4 = vrot.slane %v223_v2, 7  ;;  %v226_v5 = vrot.slane %v224_v3, 7  ;;  %v232_v10 = vrot.slane %v223_v2, 1  ;;  %v233_v11 = vrot.slane %v224_v3, 1 }
  0x58   : > { %v217_v1 = vshrl.u32 %v216_v0, 7  ;;  %v453_v15 = vld [vmem:[#allocation5 + $0x1] ss:$0 sm:$0xff]  ;;  %v451_v16 = vld [vmem:[#allocation5] ss:$0 sm:$0xff]  ;;  %s203_s26 = scalar_lea.vmem [#allocation7], %s448_s7 }
  0x59   : > { %v452_v19 = vld [vmem:[%s909_s2] ss:$0 sm:$0xff]  ;;  %v454_v22 = vld [vmem:[#allocation5 + $0x2] ss:$0 sm:$0xff]  ;;  %v455_v25 = vld [vmem:[#allocation5 + $0x4] ss:$0 sm:$0xff] }
  0x5a   : > { %vm227_vm0 = vcmp.lt.s32.totalorder %v217_v1, 1  ;;  %vm219_vm1 = vcmp.eq.s32.totalorder %v217_v1, 0  ;;  %v218_v9 = vadd.s32 8, %v217_v1  ;;  %vm234_vm2 = vcmp.lt.s32.totalorder %v217_v1, 7  ;;  %v456_v27 = vld [vmem:[#allocation5 + $0x5] ss:$0 sm:$0xff] }
  0x5b   : > { %v228_v6 = vsel %vm227_vm0, %v225_v4, %v226_v5  ;;  %v229_v7 = vsel %vm227_vm0, %v226_v5, %v225_v4  ;;  %v236_v12 = vsel %vm234_vm2, %v233_v11, %v232_v10  ;;  %v235_v14 = vsel %vm234_vm2, %v232_v10, %v233_v11  ;;  %v457_v41 = vld [vmem:[#allocation5 + $0x6] ss:$0 sm:$0xff]  ;;  %v459_v48 = vld [vmem:[#allocation5 + $0x9] ss:$0 sm:$0xff]  ;;  %v458_v51 = vld [vmem:[#allocation5 + $0x8] ss:$0 sm:$0xff] }
  0x5c   : > { %267 = vrot.lane.b32.xlu1 %v228_v6, %s668_s20  ;;  %241 = vrot.lane.b32.xlu0 %v228_v6, %s669_s18  ;;  %v230_v8 = vsel %vm219_vm1, 0.0, %v229_v7  ;;  %vm222_vm3 = vcmp.eq.s32.totalorder %v218_v9, 15  ;;  %v262_v20 = vmul.f32 %v453_v15, %v228_v6  ;;  %v294_v35 = vmul.f32 %v456_v27, %v224_v3  ;;  %v460_v62 = vld [vmem:[#allocation5 + $0xa] ss:$0 sm:$0xff]  ;;  %s357_s5 = sshll.u32 %s203_s26, 4  ;;  %s467_s10 = sshll.u32 %s713_s16, 8  ;;  %s857_s5 = int_to_ptr.vmem [resolvable:$true] %s357_s5 }
  0x5d   : > { %v238_v13 = vsel %vm222_vm3, 0.0, %v236_v12  ;;  %v261_v28 = vmul.f32 %v453_v15, %v230_v8  ;;  %v293_v45 = vmul.f32 %v456_v27, %v223_v2  ;;  %v325_v55 = vmul.f32 %v459_v48, %v235_v14  ;;  %s862_s28 = scalar_lea.hbm %s910_s3, %s467_s10  ;;  %s344_s29 = scalar_lea.sflag [#allocation4], %s831_s6 }
  0x5e   : > { %v326_v54 = vmul.f32 %v459_v48, %v238_v13  ;;  %s590_s16 = scalar_lea.vmem %s857_s5, 256  ;;  %s670_s23 = smov [#allocation7]  }
  0x5f   : > { %p591_p4 = scmp.ne.s32.totalorder %s857_s5, %s590_s16  ;;  %s594_s30 = sshll.u32 %s670_s23, 4  ;;  %s595_s30 = int_to_ptr.vmem [resolvable:$false] %s594_s30 }
  0x60   : > { %279 = vrot.lane.b32.xlu1 %v224_v3, %s669_s18  ;;  %239 = vrot.lane.b32.xlu0 %v230_v8, %s669_s18  ;;  %s596_s22 = scalar_lea.vmem %s595_s30, 512  ;;  %p597_p10 = scmp.lt.s32.totalorder %s857_s5, %s595_s30 }
  0x61   : > { %p592_p6 = pnand %p591_p4, %p783_p12  ;;  %p598_p13 = scmp.lt.s32.totalorder %s596_s22, %s590_s16 }
  0x63   : > { %p593_p8 = pneg %p592_p6  ;;  %p599_p3 = por %p598_p13, %p597_p10 }
  0x64   : > { %265 = vrot.lane.b32.xlu1 %v230_v8, %s668_s20  ;;  %277 = vrot.lane.b32.xlu0 %v223_v2, %s669_s18 }
  0x65   : > { %p600_p7 = pnand %p599_p3, %p593_p8 }
  0x68   : > { %299 = vrot.lane.b32.xlu1 %v224_v3, %s668_s20  ;;  %297 = vrot.lane.b32.xlu0 %v223_v2, %s668_s20 }
  0x6c   : > { %311 = vrot.lane.b32.xlu1 %v238_v13, %s669_s18  ;;  %309 = vrot.lane.b32.xlu0 %v235_v14, %s669_s18 }
  0x70   : > { %331 = vrot.lane.b32.xlu1 %v238_v13, %s668_s20  ;;  %329 = vrot.lane.b32.xlu0 %v235_v14, %s668_s20 }
  0xce   : > { %v268_v17 = vpop.permute.xlu1 %267  ;;  %v242_v18 = vpop.permute.xlu0 %241 }
  0xcf   : > { %v248_v21 = vmul.f32 %v451_v16, %v242_v18  ;;  %v274_v29 = vmul.f32 %v454_v22, %v268_v17 }
  0xd1   : > { %v256_v23 = vadd.f32 %v452_v19, %v248_v21 }
  0xd2   : > { %v280_v24 = vpop.permute.xlu1 %279  ;;  %v240_v26 = vpop.permute.xlu0 %239 }
  0xd3   : > { %v264_v30 = vadd.f32 %v262_v20, %v256_v23  ;;  %v247_v31 = vmul.f32 %v451_v16, %v240_v26  ;;  %v286_v33 = vmul.f32 %v455_v25, %v280_v24 }
  0xd5   : > { %v276_v32 = vadd.f32 %v274_v29, %v264_v30  ;;  %v255_v34 = vadd.f32 %v452_v19, %v247_v31 }
  0xd6   : > { %v266_v36 = vpop.permute.xlu1 %265  ;;  %v278_v37 = vpop.permute.xlu0 %277 }
  0xd7   : > { %v288_v38 = vadd.f32 %v286_v33, %v276_v32  ;;  %v263_v39 = vadd.f32 %v261_v28, %v255_v34  ;;  %v273_v40 = vmul.f32 %v454_v22, %v266_v36  ;;  %v285_v43 = vmul.f32 %v455_v25, %v278_v37 }
  0xd9   : > { %v275_v42 = vadd.f32 %v273_v40, %v263_v39  ;;  %v296_v44 = vadd.f32 %v294_v35, %v288_v38 }
  0xda   : > { %v300_v46 = vpop.permute.xlu1 %299  ;;  %v298_v47 = vpop.permute.xlu0 %297 }
  0xdb   : > { %v287_v49 = vadd.f32 %v285_v43, %v275_v42  ;;  %v306_v50 = vmul.f32 %v457_v41, %v300_v46  ;;  %v305_v53 = vmul.f32 %v457_v41, %v298_v47 }
  0xdd   : > { %v295_v52 = vadd.f32 %v293_v45, %v287_v49  ;;  %v308_v58 = vadd.f32 %v306_v50, %v296_v44 }
  0xde   : > { %v312_v56 = vpop.permute.xlu1 %311  ;;  %v310_v57 = vpop.permute.xlu0 %309 }
  0xdf   : > { %v307_v59 = vadd.f32 %v305_v53, %v295_v52  ;;  %v318_v60 = vmul.f32 %v458_v51, %v312_v56  ;;  %v317_v61 = vmul.f32 %v458_v51, %v310_v57 }
  0xe1   : > { %v320_v63 = vadd.f32 %v318_v60, %v308_v58  ;;  %v319_v0 = vadd.f32 %v317_v61, %v307_v59 }
  0xe2   : > { %v332_v1 = vpop.permute.xlu1 %331  ;;  %v330_v2 = vpop.permute.xlu0 %329 }
  0xe3   : > { %v328_v3 = vadd.f32 %v326_v54, %v320_v63  ;;  %v338_v4 = vmul.f32 %v460_v62, %v332_v1  ;;  %v327_v5 = vadd.f32 %v325_v55, %v319_v0  ;;  %v337_v6 = vmul.f32 %v460_v62, %v330_v2 }
  0xe5   : > { %v340_v7 = vadd.f32 %v338_v4, %v328_v3  ;;  %v339_v8 = vadd.f32 %v337_v6, %v327_v5 }
  0xe7   : > { %342 = vst [vmem:[%s203_s26 + $0x8] sm:$0xff] %v340_v7  ;;  %341 = vst [vmem:[%s203_s26] sm:$0xff] %v339_v8 }
  0xe8   : > { %603 = shalt.err (!%p600_p7)
}
  0xe9   : > { %s604_s7 = scalar_lea.hbm %s862_s28, 256  ;;  %s608_s20 = scalar_lea.hbm %s910_s3, 512 }
  0xea   : > { %p605_p9 = scmp.ne.s32.totalorder %s862_s28, %s604_s7  ;;  %p609_p5 = scmp.lt.u32.totalorder %s862_s28, %s910_s3 }
  0xeb   : > { %p610_p11 = scmp.lt.u32.totalorder %s608_s20, %s604_s7  ;;  %p612_p4 = scmp.lt.u32.totalorder %s604_s7, %s862_s28 }
  0xec   : > { %p606_p2 = pnand %p605_p9, %p783_p12 }
  0xed   : > { %p611_p1 = por %p610_p11, %p609_p5 }
  0xee   : > { %p607_p0 = pneg %p606_p2 }
  0xef   : > { %p613_p6 = por %p612_p4, %p611_p1 }
  0xf1   : > { %p614_p8 = pnand %p613_p6, %p607_p0 }
  0xf3   : > { %617 = shalt.err (!%p614_p8)
}
  0xf4   : > { %s671_s26 = smov 128  }
  0xf5   : > { %474 = dma.vmem_to_hbm [thread:$0]  (%p783_p12), %s857_s5, 256, %s862_s28, %s344_s29, %s671_s26, %s671_s26, %s669_s18  }
  0xf6 PF: > { %s372_s10 = sand.u32 1, %s648_s12   ;;  %p925_p10 = scmp.ne.s32.totalorder %s915_s19, 0 }
  0xf7   : > { %p926_p13 = scmp.ge.s32.totalorder %s660_s15, 2  ;;  %s373_s11 = scalar_lea.sflag [#allocation4], %s372_s10 }
  0xf9   : > { %p485_p3 = pnand %p926_p13, %p925_p10 }
  0xfb   : > { %643 = dma.done.wait (!%p485_p3), %s373_s11, 256  }
  0xfc   : > { %645 = vsyncadd (!%p485_p3), %s373_s11, 4294967040  ;;  %p17_p7 = scmp.ge.s32.totalorder %s748_s24, 4   ;;  %s927_s12 = smov %s652_s13 }
  0xfd   : > { %s928_s13 = smov %s656_s14  ;;  %s929_s14 = smov %s779_s17 }
  0xfe   : > { %s930_s15 = smov %s748_s24  ;;  %19 = sbr.rel (!%p17_p7) target bundleno = 6 (0x6), region = 83 }
 0x105   :  { %378 = vsyncpa [#allocation3], 1 }
 0x106   :  { %380 = vsyncpa [#allocation3 + $0x1], 1 }
 0x107   :  { %381 = vsyncpa [#allocation6], 1 }
 0x108   :  { %382 = vsyncpa [#allocation4], 1 }
 0x109   :  { %384 = vsyncpa [#allocation4 + $0x1], 1 }

</bundles_post_ra>
